<compile_context>
chip_gen: v6e
topology: v6e:2x2x1
jax: 0.10.0
libtpu: 0.0.40
codegen_flags: <defaults>
</compile_context>

<pallas_src>
import functools

import jax
import jax.numpy as jnp
from jax.experimental import pallas as pl
from jax.experimental.pallas import tpu as pltpu

OUT_PAD = 8     # pad the 3-column output to 8 lanes (full last dim of the out block)
ROW_TILE = 16   # batch-tile granularity (valid for f32 and bf16 sublane packing)


def _round_up(n, m):
    return (n + m - 1) // m * m


def mlp_kernel(x_ref, w1_ref, b1_ref, w2_ref, b2_ref, w3_ref, b3_ref, o_ref):
    bf16 = jnp.bfloat16

    # Layer 1: x is f32 in VMEM; cast to bf16 for the MXU, accumulate in f32,
    # bias + ReLU in f32 (v5e has no bf16 VPU path).
    h1 = jnp.dot(x_ref[...].astype(bf16), w1_ref[...],
                 preferred_element_type=jnp.float32)
    h1 = jnp.maximum(h1 + b1_ref[...], 0.0)

    # Layer 2: (tb, H)bf16 @ (H, H)bf16 -> f32 acc, bias + ReLU in f32.
    h2 = jnp.dot(h1.astype(bf16), w2_ref[...],
                 preferred_element_type=jnp.float32)
    h2 = jnp.maximum(h2 + b2_ref[...], 0.0)

    # Layer 3: (tb, H)bf16 @ (H, OUT_PAD)bf16 (zero-padded cols) -> f32 + bias.
    out = jnp.dot(h2.astype(bf16), w3_ref[...],
                  preferred_element_type=jnp.float32)
    o_ref[...] = (out + b3_ref[...]).astype(o_ref.dtype)


@functools.partial(jax.jit, static_argnames=("block_batch",))
def net_forward(x, params, *, block_batch=4096):
    """x: (B, D) float32. params: dict of w1,b1,w2,b2,w3,b3 with weights in (in,out)."""
    w1, b1 = params["w1"], params["b1"]
    w2, b2 = params["w2"], params["b2"]
    w3, b3 = params["w3"], params["b3"]

    B, D = x.shape
    H = w1.shape[1]
    out_dim = w3.shape[1]          # = 3

    bf16 = jnp.bfloat16
    w1_bf = w1.astype(bf16)
    w2_bf = w2.astype(bf16)

    # Final layer padded only to 8 output columns (small lane-aligned writeback).
    w3_pad = jnp.zeros((H, OUT_PAD), bf16).at[:, :out_dim].set(w3.astype(bf16))
    b3_pad = jnp.zeros((1, OUT_PAD), jnp.float32).at[:, :out_dim].set(b3)

    # --- batch tiling -------------------------------------------------------
    # Big tile to amortize per-grid-step overhead, but cap so the parallel grid
    # has >= 2 steps (feeds both v7x TensorCores) when B is large enough.
    half = _round_up(pl.cdiv(B, 2), ROW_TILE)
    tb = max(ROW_TILE, min(block_batch, half))
    b_pad = _round_up(B, tb)
    x_in = x if b_pad == B else jnp.pad(x, ((0, b_pad - B), (0, 0)))

    grid = (b_pad // tb,)

    # x / out move with the grid (double-buffer pipelined); weights stay
    # resident in VMEM via a constant index_map.
    x_spec = pl.BlockSpec((tb, D), lambda i: (i, 0))
    out_spec = pl.BlockSpec((tb, OUT_PAD), lambda i: (i, 0))
    resident = lambda a: pl.BlockSpec(a.shape, lambda i: (0,) * a.ndim)

    out_padded = pl.pallas_call(
        mlp_kernel,
        out_shape=jax.ShapeDtypeStruct((b_pad, OUT_PAD), jnp.float32),
        grid=grid,
        in_specs=[x_spec,
                  resident(w1_bf), resident(b1),
                  resident(w2_bf), resident(b2),
                  resident(w3_pad), resident(b3_pad)],
        out_specs=out_spec,
        compiler_params=pltpu.CompilerParams(
            dimension_semantics=("parallel",)),   # shard batch across TCs
    )(x_in, w1_bf, b1, w2_bf, b2, w3_pad, b3_pad)

    # Drop batch padding and the zero-padded output lanes.
    return out_padded[:B, :out_dim]


def init_params(key, input_dim, hidden, out_dim=3):
    """Init mimicking nn.Linear's uniform(-1/sqrt(fan_in), 1/sqrt(fan_in))."""
    ks = jax.random.split(key, 6)

    def linear(kw, kb, fan_in, fan_out):
        bound = 1.0 / jnp.sqrt(jnp.float32(fan_in))
        # Stored as (in, out) so the kernel computes x @ W  (== x @ W_torch.T).
        w = jax.random.uniform(kw, (fan_in, fan_out), jnp.float32, -bound, bound)
        b = jax.random.uniform(kb, (1, fan_out), jnp.float32, -bound, bound)
        return w, b

    w1, b1 = linear(ks[0], ks[1], input_dim, hidden)
    w2, b2 = linear(ks[2], ks[3], hidden, hidden)
    w3, b3 = linear(ks[4], ks[5], hidden, out_dim)
    return {"w1": w1, "b1": b1, "w2": w2, "b2": b2, "w3": w3, "b3": b3}


def net_forward_ref_bf16(x, params):
    """Reference mirroring the kernel's bf16-operand / f32-accumulate math."""
    f32, bf16 = jnp.float32, jnp.bfloat16
    bw = lambda a: a.astype(bf16).astype(f32)
    h = jnp.maximum(bw(x) @ bw(params["w1"]) + params["b1"], 0.0)
    h = jnp.maximum(bw(h) @ bw(params["w2"]) + params["b2"], 0.0)
    return bw(h) @ bw(params["w3"]) + params["b3"]


def net_forward_ref_f32(x, params):
    """Plain f32 reference (loose tolerance vs bf16 kernel)."""
    h = jnp.maximum(x @ params["w1"] + params["b1"], 0.0)
    h = jnp.maximum(h @ params["w2"] + params["b2"], 0.0)
    return h @ params["w3"] + params["b3"]


if __name__ == "__main__":
    key = jax.random.PRNGKey(0)
    k_x, k_p, k_x2 = jax.random.split(key, 3)

    batch, input_dim, hidden = 8, 16, 32
    x = jax.random.normal(k_x, (batch, input_dim), jnp.float32)
    params = init_params(k_p, input_dim, hidden)

    # Small-shape run (single grid step, batch padded 8 -> 16).
    y = jax.block_until_ready(net_forward(x, params))
    assert y.shape == (batch, 3), y.shape
    assert jnp.allclose(y, net_forward_ref_bf16(x, params), atol=1e-3, rtol=1e-3)
    assert jnp.allclose(y, net_forward_ref_f32(x, params), atol=5e-2, rtol=5e-2)

    # Exercise batch tiling + padding + a >1-step parallel grid.
    x2 = jax.random.normal(k_x2, (300, input_dim), jnp.float32)
    y2 = jax.block_until_ready(net_forward(x2, params))
    assert y2.shape == (300, 3), y2.shape
    assert jnp.allclose(y2, net_forward_ref_bf16(x2, params), atol=1e-3, rtol=1e-3)

    print("KERNEL_OK")
</pallas_src>

<mosaic_0001>
module attributes {stable_mosaic.version = 11 : i64} {
  func.func @mlp_kernel(%arg0: i32, %arg1: memref<16x16xf32, #tpu.memory_space<vmem>>, %arg2: memref<16x32xbf16, #tpu.memory_space<vmem>>, %arg3: memref<1x32xf32, #tpu.memory_space<vmem>>, %arg4: memref<32x32xbf16, #tpu.memory_space<vmem>>, %arg5: memref<1x32xf32, #tpu.memory_space<vmem>>, %arg6: memref<32x8xbf16, #tpu.memory_space<vmem>>, %arg7: memref<1x8xf32, #tpu.memory_space<vmem>>, %arg8: memref<16x8xf32, #tpu.memory_space<vmem>>) attributes {dimension_semantics = [#tpu.dimension_semantics<parallel>], iteration_bounds = array<i64: 1>, scalar_prefetch = 0 : i64, scratch_operands = 0 : i64, tpu.core_type = #tpu.core_type<tc>, window_params = [{transform_indices = @transform_0, window_bounds = array<i64: 16, 16>}, {pipeline_mode = #tpu.pipeline_mode<synchronous>, transform_indices = @transform_1, window_bounds = array<i64: 16, 32>}, {pipeline_mode = #tpu.pipeline_mode<synchronous>, transform_indices = @transform_2, window_bounds = array<i64: 1, 32>}, {pipeline_mode = #tpu.pipeline_mode<synchronous>, transform_indices = @transform_3, window_bounds = array<i64: 32, 32>}, {pipeline_mode = #tpu.pipeline_mode<synchronous>, transform_indices = @transform_4, window_bounds = array<i64: 1, 32>}, {pipeline_mode = #tpu.pipeline_mode<synchronous>, transform_indices = @transform_5, window_bounds = array<i64: 32, 8>}, {pipeline_mode = #tpu.pipeline_mode<synchronous>, transform_indices = @transform_6, window_bounds = array<i64: 1, 8>}, {transform_indices = @transform_7, window_bounds = array<i64: 16, 8>}]} {
    %c0 = arith.constant 0 : index
    %c0_0 = arith.constant 0 : index
    %0 = vector.load %arg1[%c0, %c0_0] : memref<16x16xf32, #tpu.memory_space<vmem>>, vector<16x16xf32>
    %1 = arith.truncf %0 : vector<16x16xf32> to vector<16x16xbf16>
    %c0_1 = arith.constant 0 : index
    %c0_2 = arith.constant 0 : index
    %2 = vector.load %arg2[%c0_1, %c0_2] : memref<16x32xbf16, #tpu.memory_space<vmem>>, vector<16x32xbf16>
    %cst = arith.constant dense<0.000000e+00> : vector<16x32xf32>
    %3 = tpu.matmul %1, %2, %cst {dimension_numbers = #tpu.dot_dimension_numbers<[1], [0], [0], [1], [0, 0, 1, 1], [], []>} : vector<16x16xbf16>, vector<16x32xbf16>, vector<16x32xf32> -> vector<16x32xf32>
    %c0_3 = arith.constant 0 : index
    %c0_4 = arith.constant 0 : index
    %4 = vector.load %arg3[%c0_3, %c0_4] : memref<1x32xf32, #tpu.memory_space<vmem>>, vector<1x32xf32>
    %5 = vector.broadcast %4 : vector<1x32xf32> to vector<16x32xf32>
    %6 = arith.addf %3, %5 : vector<16x32xf32>
    %cst_5 = arith.constant 0.000000e+00 : f32
    %7 = vector.broadcast %cst_5 : f32 to vector<16x32xf32>
    %8 = arith.maximumf %6, %7 : vector<16x32xf32>
    %9 = arith.truncf %8 : vector<16x32xf32> to vector<16x32xbf16>
    %c0_6 = arith.constant 0 : index
    %c0_7 = arith.constant 0 : index
    %10 = vector.load %arg4[%c0_6, %c0_7] : memref<32x32xbf16, #tpu.memory_space<vmem>>, vector<32x32xbf16>
    %cst_8 = arith.constant dense<0.000000e+00> : vector<16x32xf32>
    %11 = tpu.matmul %9, %10, %cst_8 {dimension_numbers = #tpu.dot_dimension_numbers<[1], [0], [0], [1], [0, 0, 1, 1], [], []>} : vector<16x32xbf16>, vector<32x32xbf16>, vector<16x32xf32> -> vector<16x32xf32>
    %c0_9 = arith.constant 0 : index
    %c0_10 = arith.constant 0 : index
    %12 = vector.load %arg5[%c0_9, %c0_10] : memref<1x32xf32, #tpu.memory_space<vmem>>, vector<1x32xf32>
    %13 = vector.broadcast %12 : vector<1x32xf32> to vector<16x32xf32>
    %14 = arith.addf %11, %13 : vector<16x32xf32>
    %cst_11 = arith.constant 0.000000e+00 : f32
    %15 = vector.broadcast %cst_11 : f32 to vector<16x32xf32>
    %16 = arith.maximumf %14, %15 : vector<16x32xf32>
    %17 = arith.truncf %16 : vector<16x32xf32> to vector<16x32xbf16>
    %c0_12 = arith.constant 0 : index
    %c0_13 = arith.constant 0 : index
    %18 = vector.load %arg6[%c0_12, %c0_13] : memref<32x8xbf16, #tpu.memory_space<vmem>>, vector<32x8xbf16>
    %cst_14 = arith.constant dense<0.000000e+00> : vector<16x8xf32>
    %19 = tpu.matmul %17, %18, %cst_14 {dimension_numbers = #tpu.dot_dimension_numbers<[1], [0], [0], [1], [0, 0, 1, 1], [], []>} : vector<16x32xbf16>, vector<32x8xbf16>, vector<16x8xf32> -> vector<16x8xf32>
    %c0_15 = arith.constant 0 : index
    %c0_16 = arith.constant 0 : index
    %20 = vector.load %arg7[%c0_15, %c0_16] : memref<1x8xf32, #tpu.memory_space<vmem>>, vector<1x8xf32>
    %21 = vector.broadcast %20 : vector<1x8xf32> to vector<16x8xf32>
    %22 = arith.addf %19, %21 : vector<16x8xf32>
    %c0_17 = arith.constant 0 : index
    %c0_18 = arith.constant 0 : index
    %23 = vector.load %arg8[%c0_17, %c0_18] : memref<16x8xf32, #tpu.memory_space<vmem>>, vector<16x8xf32>
    tpu.vector_store %arg8[%c0_17, %c0_18], %22 {strides = array<i32>} : memref<16x8xf32, #tpu.memory_space<vmem>>, vector<16x8xf32>,
    return
  }
  func.func @transform_0(%arg0: i32) -> (i32, i32) {
    %c0_i32 = arith.constant 0 : i32
    %c0_i32_0 = arith.constant 0 : i32
    return %arg0, %c0_i32 : i32, i32
  }
  func.func @transform_1(%arg0: i32) -> (i32, i32) {
    %c0_i32 = arith.constant 0 : i32
    %c0_i32_0 = arith.constant 0 : i32
    %c0_i32_1 = arith.constant 0 : i32
    return %c0_i32, %c0_i32_0 : i32, i32
  }
  func.func @transform_2(%arg0: i32) -> (i32, i32) {
    %c0_i32 = arith.constant 0 : i32
    %c0_i32_0 = arith.constant 0 : i32
    %c0_i32_1 = arith.constant 0 : i32
    return %c0_i32, %c0_i32_0 : i32, i32
  }
  func.func @transform_3(%arg0: i32) -> (i32, i32) {
    %c0_i32 = arith.constant 0 : i32
    %c0_i32_0 = arith.constant 0 : i32
    %c0_i32_1 = arith.constant 0 : i32
    return %c0_i32, %c0_i32_0 : i32, i32
  }
  func.func @transform_4(%arg0: i32) -> (i32, i32) {
    %c0_i32 = arith.constant 0 : i32
    %c0_i32_0 = arith.constant 0 : i32
    %c0_i32_1 = arith.constant 0 : i32
    return %c0_i32, %c0_i32_0 : i32, i32
  }
  func.func @transform_5(%arg0: i32) -> (i32, i32) {
    %c0_i32 = arith.constant 0 : i32
    %c0_i32_0 = arith.constant 0 : i32
    %c0_i32_1 = arith.constant 0 : i32
    return %c0_i32, %c0_i32_0 : i32, i32
  }
  func.func @transform_6(%arg0: i32) -> (i32, i32) {
    %c0_i32 = arith.constant 0 : i32
    %c0_i32_0 = arith.constant 0 : i32
    %c0_i32_1 = arith.constant 0 : i32
    return %c0_i32, %c0_i32_0 : i32, i32
  }
  func.func @transform_7(%arg0: i32) -> (i32, i32) {
    %c0_i32 = arith.constant 0 : i32
    %c0_i32_0 = arith.constant 0 : i32
    return %arg0, %c0_i32 : i32, i32
  }
}

</mosaic_0001>

<bundles_post_ra>
// kernel: net_forward.1
= control target key start
LH: loop header
LB: loop body
LE: loop exit
PB: predicated region body
PF: predicated region fallthrough
CT: control target
= control target key end

     0   :  { %v286_v0 = vmov 0.0   ;;  %vm287_vm0 = vmmov 0   ;;  %vm45_vm1 = vcmask 130048   ;;  %vm116_vm2 = vcmask 261120   ;;  %s366_s1 = inlined_call_operand.vmem [shape: bf16[16,32], index: 1, kind: input, shape index: {}]   ;;  %s367_s0 = inlined_call_operand.vmem [shape: f32[16,16], index: 0, kind: input, shape index: {}]   ;;  %s368_s3 = inlined_call_operand.vmem [shape: bf16[32,32], index: 3, kind: input, shape index: {}]   ;;  %s369_s2 = inlined_call_operand.vmem [shape: f32[1,32], index: 2, kind: input, shape index: {}]   ;;  %s370_s5 = inlined_call_operand.vmem [shape: bf16[32,8], index: 5, kind: input, shape index: {}]   ;;  %s371_s4 = inlined_call_operand.vmem [shape: f32[1,32], index: 4, kind: input, shape index: {}]   ;;  %s372_s6 = inlined_call_operand.vmem [shape: f32[1,8], index: 6, kind: input, shape index: {}]   ;;  %s373_s7 = inlined_call_operand.vmem [shape: f32[16,8], index: 7, kind: output, shape index: {}]  }
   0x1   :  { %257 = vmatprep.subr.bf16.mxu0 %v286_v0  ;;  %v281_v1 = vld [vmem:[%s366_s1] sm:$0xff]   ;;  %259 = vmatprep.mubr.msk.bf16.mxu0 %vm287_vm0, %v286_v0  ;;  %v28_v3 = vld [vmem:[%s367_s0 + $0x8] sm:$0xff]  ;;  %vm231_vm3 = vcmask 64512  }
   0x2   :  { %v27_v2 = vld [vmem:[%s367_s0] sm:$0xff]  ;;  %263 = vmatprep.subr.bf16.mxu1 %v286_v0  ;;  %267 = vmatprep.mubr.msk.bf16.mxu1 %vm287_vm0, %v286_v0  ;;  %v282_v5 = vld [vmem:[%s368_s3 + $0x8] sm:$0xff]  }
   0x3   :  { %258 = vmatpush3.bf16.msra.mxu0 %v281_v1  ;;  %v29_v4 = vpack.c.bf16 %v28_v3, %v27_v2  ;;  %264 = vmatpush3.bf16.msra.mxu1 %v282_v5  ;;  %v283_v6 = vld [vmem:[%s368_s3] sm:$0xff]   ;;  %v284_v17 = vld [vmem:[%s370_s5 + $0x8] sm:$0xff]  }
   0x4   :  { %271 = vmatprep.subr.bf16.mxu0 %v286_v0  ;;  %265 = vmatprep.subr.bf16.mxu1 %v286_v0  ;;  %v238_v7 = vld [vmem:[%s369_s2] ss:$0 sm:$0xff] }
   0x5   :  { %v285_v18 = vld [vmem:[%s370_s5] sm:$0xff]  }
   0x6   :  { %260 = vmatmul.mubr.msk.bf16.vlgmr.msra.gmra.mxu0 %vm45_vm1, %v29_v4  ;;  %v241_v19 = vld [vmem:[%s371_s4] ss:$0 sm:$0xff] }
   0x7   :  { %275 = vmatprep.mubr.msk.bf16.mxu0 %vm287_vm0, %v286_v0  ;;  %266 = vmatpush3.bf16.msra.mxu1 %v283_v6  ;;  %v245_v29 = vld [vmem:[%s372_s6] ss:$0 sm:$0xff] }
   0x8   :  { %272 = vmatpush3.bf16.msra.mxu0 %v284_v17 }
   0x9   :  { %273 = vmatprep.subr.bf16.mxu0 %v286_v0 }
   0xc   :  { %274 = vmatpush3.bf16.msra.mxu0 %v285_v18 }
  0xc6   :  { %v83_v8 = vpop.f32.mrf.mxu0 }
  0xc7   :  { %v84_v10 = vadd.f32 %v238_v7, %v83_v8 }
  0xc8   :  { %v261_v9 = vpop.f32.mrf.mxu0 }
  0xc9   :  { %v90_v14 = vmax.f32 %v84_v10, 0.0 }
  0xca   :  { %v86_v11 = vpop.f32.mrf.mxu0 }
  0xcb   :  { %v87_v12 = vadd.f32 %v238_v7, %v86_v11 }
  0xcc   :  { %v262_v13 = vpop.f32.mrf.mxu0 }
  0xcd   :  { %v91_v15 = vmax.f32 %v87_v12, 0.0 }
  0xcf   :  { %v92_v16 = vpack.c.bf16 %v91_v15, %v90_v14 }
  0xd1   :  { %268 = vmatmul.mubr.msk.bf16.vlgmr.msra.gmra.mxu1 %vm116_vm2, %v92_v16 }
 0x191   :  { %v154_v20 = vpop.f32.mrf.mxu1 }
 0x192   :  { %v155_v22 = vadd.f32 %v241_v19, %v154_v20 }
 0x193   :  { %v269_v21 = vpop.f32.mrf.mxu1 }
 0x194   :  { %v161_v26 = vmax.f32 %v155_v22, 0.0 }
 0x195   :  { %v157_v23 = vpop.f32.mrf.mxu1 }
 0x196   :  { %v158_v24 = vadd.f32 %v241_v19, %v157_v23 }
 0x197   :  { %v270_v25 = vpop.f32.mrf.mxu1 }
 0x198   :  { %v162_v27 = vmax.f32 %v158_v24, 0.0 }
 0x19a   :  { %v163_v28 = vpack.c.bf16 %v162_v27, %v161_v26 }
 0x19c   :  { %276 = vmatmul.mubr.msk.bf16.vlgmr.msra.gmra.mxu0 %vm116_vm2, %v163_v28 }
 0x25c   :  { %v224_v30 = vpop.f32.mrf.mxu0 }
 0x25d   :  { %v225_v31 = vadd.f32 %v245_v29, %v224_v30 }
 0x25e   :  { %v277_v32 = vpop.f32.mrf.mxu0 }
 0x25f   :  { %232 = vst.msk [vmem:[%s373_s7] sm:$0xff] %vm231_vm3, %v225_v31 }
 0x260   :  { %v227_v33 = vpop.f32.mrf.mxu0 }
 0x261   :  { %v228_v34 = vadd.f32 %v245_v29, %v227_v33 }
 0x262   :  { %v278_v35 = vpop.f32.mrf.mxu0 }
 0x263   :  { %233 = vst.msk [vmem:[%s373_s7 + $0x8] sm:$0xff] %vm231_vm3, %v228_v34 }

</bundles_post_ra>
